<compile_context>
chip_gen: v7x
topology: tpu7x:2x2x1
jax: 0.10.0
libtpu: 0.0.40
codegen_flags: <defaults>
</compile_context>

<pallas_src>
import functools

import jax
import jax.numpy as jnp
from jax import lax
from jax.experimental import pallas as pl
from jax.experimental.pallas import tpu as pltpu


def _self_attention_kernel(x_ref, wqkv_ref, bqkv_ref, o_ref, *, batch, seq, dim):
    # x_ref: (B*S, D), wqkv_ref: (D, 3D), bqkv_ref: (1, 3D), o_ref: (B*S, D)
    x = x_ref[...]

    # One fused projection matmul for the whole batch: (B*S, 3D).
    qkv = jnp.dot(x, wqkv_ref[...], preferred_element_type=jnp.float32) + bqkv_ref[...]
    q = qkv[:, :dim]
    k = qkv[:, dim:2 * dim]
    v = qkv[:, 2 * dim:]

    scale = 1.0 / (dim ** 0.5)  # static Python constant, folds into the VPU mul

    outs = []
    for b in range(batch):  # tiny static unroll over the batch (B=2)
        lo, hi = b * seq, (b + 1) * seq
        qb, kb, vb = q[lo:hi], k[lo:hi], v[lo:hi]

        # scores = (q @ k^T) / sqrt(D) without materializing k.T
        scores = lax.dot_general(
            qb, kb, (((1,), (1,)), ((), ())),
            preferred_element_type=jnp.float32) * scale

        # softmax over the last axis (torch dim=2)
        m = jnp.max(scores, axis=-1, keepdims=True)
        e = jnp.exp(scores - m)
        denom = jnp.sum(e, axis=-1, keepdims=True)
        attn = e * pl.reciprocal(denom, approx=True)

        outs.append(jnp.dot(attn, vb, preferred_element_type=jnp.float32))

    # Single full-tile store of the whole batch.
    o_ref[...] = jnp.concatenate(outs, axis=0)


def self_attention(x, wq, bq, wk, bk, wv, bv):
    """x: (B, S, D) float32. Weights are (D, D) in (in, out) layout, biases (D,)."""
    B, S, D = x.shape
    x2d = x.reshape(B * S, D)
    wqkv = jnp.concatenate([wq, wk, wv], axis=1)                   # (D, 3D)
    bqkv = jnp.concatenate([bq, bk, bv], axis=0).reshape(1, 3 * D)  # (1, 3D)

    kernel = functools.partial(_self_attention_kernel, batch=B, seq=S, dim=D)

    out2d = pl.pallas_call(
        kernel,
        out_shape=jax.ShapeDtypeStruct((B * S, D), jnp.float32),
        grid_spec=pltpu.PrefetchScalarGridSpec(
            num_scalar_prefetch=0,
            grid=(1,),
            in_specs=[
                pl.BlockSpec((B * S, D), lambda i: (0, 0)),     # x slab
                pl.BlockSpec((D, 3 * D), lambda i: (0, 0)),     # fused W_qkv
                pl.BlockSpec((1, 3 * D), lambda i: (0, 0)),     # fused b_qkv
            ],
            out_specs=pl.BlockSpec((B * S, D), lambda i: (0, 0)),
        ),
        compiler_params=pltpu.CompilerParams(
            dimension_semantics=("arbitrary",)),
    )(x2d, wqkv, bqkv)

    return out2d.reshape(B, S, D)


def reference(x, wq, bq, wk, bk, wv, bv):
    q = x @ wq + bq
    k = x @ wk + bk
    v = x @ wv + bv
    scores = jnp.einsum("bsd,btd->bst", q, k) / (x.shape[-1] ** 0.5)
    attn = jax.nn.softmax(scores, axis=2)
    return jnp.einsum("bst,btd->bsd", attn, v)


if __name__ == "__main__":
    # input_dim=16 (the module slices qkv[..., :16]); batch=2, seq=8
    B, S, D = 2, 8, 16
    key = jax.random.PRNGKey(0)
    kx, kq, kk_, kv, kbq, kbk, kbv = jax.random.split(key, 7)

    x = jax.random.normal(kx, (B, S, D), dtype=jnp.float32)
    # deterministic "Linear" params; stored as (in, out) = weight.T
    wq = jax.random.normal(kq, (D, D), dtype=jnp.float32) * 0.1
    wk = jax.random.normal(kk_, (D, D), dtype=jnp.float32) * 0.1
    wv = jax.random.normal(kv, (D, D), dtype=jnp.float32) * 0.1
    bq = jax.random.normal(kbq, (D,), dtype=jnp.float32) * 0.1
    bk = jax.random.normal(kbk, (D,), dtype=jnp.float32) * 0.1
    bv = jax.random.normal(kbv, (D,), dtype=jnp.float32) * 0.1

    # TODO(synk): the PyTorch module also builds a fused qkv Linear and prints
    # `queries - q_new` plus several shape strings; those are debug-print side
    # effects with no bearing on the returned tensor, so they are not
    # reproduced here (the fused-QKV idea itself IS used inside the kernel).

    out = jax.block_until_ready(self_attention(x, wq, bq, wk, bk, wv, bv))
    ref = reference(x, wq, bq, wk, bk, wv, bv)
    assert out.shape == (B, S, D)
    # tolerance loosened slightly vs 1e-5 to cover pl.reciprocal(approx=True)
    assert jnp.allclose(out, ref, atol=1e-3, rtol=1e-3)
    print("KERNEL_OK")
</pallas_src>

<mosaic_0001>
module attributes {stable_mosaic.version = 11 : i64} {
  func.func @_self_attention_kernel(%arg0: i32, %arg1: memref<16x16xf32, #tpu.memory_space<vmem>>, %arg2: memref<16x48xf32, #tpu.memory_space<vmem>>, %arg3: memref<1x48xf32, #tpu.memory_space<vmem>>, %arg4: memref<16x16xf32, #tpu.memory_space<vmem>>) attributes {dimension_semantics = [#tpu.dimension_semantics<arbitrary>], iteration_bounds = array<i64: 1>, scalar_prefetch = 0 : i64, scratch_operands = 0 : i64, tpu.core_type = #tpu.core_type<tc>, window_params = [{pipeline_mode = #tpu.pipeline_mode<synchronous>, transform_indices = @transform_0, window_bounds = array<i64: 16, 16>}, {pipeline_mode = #tpu.pipeline_mode<synchronous>, transform_indices = @transform_1, window_bounds = array<i64: 16, 48>}, {pipeline_mode = #tpu.pipeline_mode<synchronous>, transform_indices = @transform_2, window_bounds = array<i64: 1, 48>}, {pipeline_mode = #tpu.pipeline_mode<synchronous>, transform_indices = @transform_3, window_bounds = array<i64: 16, 16>}]} {
    %c0 = arith.constant 0 : index
    %c0_0 = arith.constant 0 : index
    %0 = vector.load %arg1[%c0, %c0_0] : memref<16x16xf32, #tpu.memory_space<vmem>>, vector<16x16xf32>
    %c0_1 = arith.constant 0 : index
    %c0_2 = arith.constant 0 : index
    %1 = vector.load %arg2[%c0_1, %c0_2] : memref<16x48xf32, #tpu.memory_space<vmem>>, vector<16x48xf32>
    %cst = arith.constant dense<0.000000e+00> : vector<16x48xf32>
    %2 = tpu.matmul %0, %1, %cst {dimension_numbers = #tpu.dot_dimension_numbers<[1], [0], [0], [1], [0, 0, 1, 1], [], []>} : vector<16x16xf32>, vector<16x48xf32>, vector<16x48xf32> -> vector<16x48xf32>
    %c0_3 = arith.constant 0 : index
    %c0_4 = arith.constant 0 : index
    %3 = vector.load %arg3[%c0_3, %c0_4] : memref<1x48xf32, #tpu.memory_space<vmem>>, vector<1x48xf32>
    %4 = vector.broadcast %3 : vector<1x48xf32> to vector<16x48xf32>
    %5 = arith.addf %2, %4 : vector<16x48xf32>
    %6 = vector.extract_strided_slice %5 {offsets = [0, 0], sizes = [16, 16], strides = [1, 1]} : vector<16x48xf32> to vector<16x16xf32>
    %7 = vector.extract_strided_slice %5 {offsets = [0, 16], sizes = [16, 16], strides = [1, 1]} : vector<16x48xf32> to vector<16x16xf32>
    %8 = vector.extract_strided_slice %5 {offsets = [0, 32], sizes = [16, 16], strides = [1, 1]} : vector<16x48xf32> to vector<16x16xf32>
    %9 = vector.extract_strided_slice %6 {offsets = [0, 0], sizes = [8, 16], strides = [1, 1]} : vector<16x16xf32> to vector<8x16xf32>
    %10 = vector.extract_strided_slice %7 {offsets = [0, 0], sizes = [8, 16], strides = [1, 1]} : vector<16x16xf32> to vector<8x16xf32>
    %11 = vector.extract_strided_slice %8 {offsets = [0, 0], sizes = [8, 16], strides = [1, 1]} : vector<16x16xf32> to vector<8x16xf32>
    %cst_5 = arith.constant dense<0.000000e+00> : vector<8x8xf32>
    %12 = tpu.matmul %9, %10, %cst_5 {dimension_numbers = #tpu.dot_dimension_numbers<[1], [1], [0], [0], [0, 0, 1, 0], [], []>} : vector<8x16xf32>, vector<8x16xf32>, vector<8x8xf32> -> vector<8x8xf32>
    %cst_6 = arith.constant 2.500000e-01 : f32
    %13 = vector.broadcast %cst_6 : f32 to vector<8x8xf32>
    %14 = arith.mulf %12, %13 : vector<8x8xf32>
    %cst_7 = arith.constant dense<0xFF800000> : vector<8xf32>
    %15 = vector.multi_reduction <maximumf>, %14, %cst_7 [1] : vector<8x8xf32> to vector<8xf32>
    %16 = vector.shape_cast %15 : vector<8xf32> to vector<8x1xf32>
    %17 = vector.broadcast %16 : vector<8x1xf32> to vector<8x8xf32>
    %18 = arith.subf %14, %17 : vector<8x8xf32>
    %19 = math.exp %18 : vector<8x8xf32>
    %cst_8 = arith.constant dense<0.000000e+00> : vector<8xf32>
    %20 = vector.multi_reduction <add>, %19, %cst_8 [1] : vector<8x8xf32> to vector<8xf32>
    %21 = vector.shape_cast %20 : vector<8xf32> to vector<8x1xf32>
    %22 = tpu.reciprocal %21 {approx = true} : vector<8x1xf32> -> vector<8x1xf32>
    %23 = vector.broadcast %22 : vector<8x1xf32> to vector<8x8xf32>
    %24 = arith.mulf %19, %23 : vector<8x8xf32>
    %cst_9 = arith.constant dense<0.000000e+00> : vector<8x16xf32>
    %25 = tpu.matmul %24, %11, %cst_9 {dimension_numbers = #tpu.dot_dimension_numbers<[1], [0], [0], [1], [0, 0, 1, 1], [], []>} : vector<8x8xf32>, vector<8x16xf32>, vector<8x16xf32> -> vector<8x16xf32>
    %26 = vector.extract_strided_slice %6 {offsets = [8, 0], sizes = [8, 16], strides = [1, 1]} : vector<16x16xf32> to vector<8x16xf32>
    %27 = vector.extract_strided_slice %7 {offsets = [8, 0], sizes = [8, 16], strides = [1, 1]} : vector<16x16xf32> to vector<8x16xf32>
    %28 = vector.extract_strided_slice %8 {offsets = [8, 0], sizes = [8, 16], strides = [1, 1]} : vector<16x16xf32> to vector<8x16xf32>
    %cst_10 = arith.constant dense<0.000000e+00> : vector<8x8xf32>
    %29 = tpu.matmul %26, %27, %cst_10 {dimension_numbers = #tpu.dot_dimension_numbers<[1], [1], [0], [0], [0, 0, 1, 0], [], []>} : vector<8x16xf32>, vector<8x16xf32>, vector<8x8xf32> -> vector<8x8xf32>
    %cst_11 = arith.constant 2.500000e-01 : f32
    %30 = vector.broadcast %cst_11 : f32 to vector<8x8xf32>
    %31 = arith.mulf %29, %30 : vector<8x8xf32>
    %cst_12 = arith.constant dense<0xFF800000> : vector<8xf32>
    %32 = vector.multi_reduction <maximumf>, %31, %cst_12 [1] : vector<8x8xf32> to vector<8xf32>
    %33 = vector.shape_cast %32 : vector<8xf32> to vector<8x1xf32>
    %34 = vector.broadcast %33 : vector<8x1xf32> to vector<8x8xf32>
    %35 = arith.subf %31, %34 : vector<8x8xf32>
    %36 = math.exp %35 : vector<8x8xf32>
    %cst_13 = arith.constant dense<0.000000e+00> : vector<8xf32>
    %37 = vector.multi_reduction <add>, %36, %cst_13 [1] : vector<8x8xf32> to vector<8xf32>
    %38 = vector.shape_cast %37 : vector<8xf32> to vector<8x1xf32>
    %39 = tpu.reciprocal %38 {approx = true} : vector<8x1xf32> -> vector<8x1xf32>
    %40 = vector.broadcast %39 : vector<8x1xf32> to vector<8x8xf32>
    %41 = arith.mulf %36, %40 : vector<8x8xf32>
    %cst_14 = arith.constant dense<0.000000e+00> : vector<8x16xf32>
    %42 = tpu.matmul %41, %28, %cst_14 {dimension_numbers = #tpu.dot_dimension_numbers<[1], [0], [0], [1], [0, 0, 1, 1], [], []>} : vector<8x8xf32>, vector<8x16xf32>, vector<8x16xf32> -> vector<8x16xf32>
    %43 = tpu.concatenate %25, %42 in 0 : vector<8x16xf32>, vector<8x16xf32> -> vector<16x16xf32>
    %c0_15 = arith.constant 0 : index
    %c0_16 = arith.constant 0 : index
    %44 = vector.load %arg4[%c0_15, %c0_16] : memref<16x16xf32, #tpu.memory_space<vmem>>, vector<16x16xf32>
    tpu.vector_store %arg4[%c0_15, %c0_16], %43 {strides = array<i32>} : memref<16x16xf32, #tpu.memory_space<vmem>>, vector<16x16xf32>,
    return
  }
  func.func @transform_0(%arg0: i32) -> (i32, i32) {
    %c0_i32 = arith.constant 0 : i32
    %c0_i32_0 = arith.constant 0 : i32
    %c0_i32_1 = arith.constant 0 : i32
    return %c0_i32, %c0_i32_0 : i32, i32
  }
  func.func @transform_1(%arg0: i32) -> (i32, i32) {
    %c0_i32 = arith.constant 0 : i32
    %c0_i32_0 = arith.constant 0 : i32
    %c0_i32_1 = arith.constant 0 : i32
    return %c0_i32, %c0_i32_0 : i32, i32
  }
  func.func @transform_2(%arg0: i32) -> (i32, i32) {
    %c0_i32 = arith.constant 0 : i32
    %c0_i32_0 = arith.constant 0 : i32
    %c0_i32_1 = arith.constant 0 : i32
    return %c0_i32, %c0_i32_0 : i32, i32
  }
  func.func @transform_3(%arg0: i32) -> (i32, i32) {
    %c0_i32 = arith.constant 0 : i32
    %c0_i32_0 = arith.constant 0 : i32
    %c0_i32_1 = arith.constant 0 : i32
    return %c0_i32, %c0_i32_0 : i32, i32
  }
}

</mosaic_0001>

<bundles_post_ra>
// kernel: tpu_custom_call.1
= control target key start
LH: loop header
LB: loop body
LE: loop exit
PB: predicated region body
PF: predicated region fallthrough
CT: control target
= control target key end

     0   :  { %8 = vsyncpa [#allocation3], 0  ;;  %s731_s0 = inlined_call_operand.hbm [shape: f32[16,16], index: 0, kind: input, shape index: {}]   ;;  %s732_s1 = inlined_call_operand.hbm [shape: f32[16,48], index: 1, kind: input, shape index: {}]   ;;  %s733_s2 = inlined_call_operand.vmem [shape: f32[1,48], index: 2, kind: input, shape index: {}]   ;;  %s734_s3 = inlined_call_operand.hbm [shape: f32[16,16], index: 3, kind: output, shape index: {}]  }
   0x1   :  { %9 = vsyncpa [#allocation6], 0 }
   0x2   :  { %10 = vsyncpa [#allocation4], 0  ;;  %s628_s12 = smov [#allocation2]   ;;  %s556_s16 = scalar_lea.hbm %s731_s0, 256 }
   0x3   :  { %s16_s13 = sshll.u32 %s628_s12, 4  ;;  %p557_p0 = scmp.ne.s32.totalorder %s731_s0, %s556_s16  ;;  %s17_s13 = int_to_ptr.vmem [resolvable:$true] %s16_s13 }
   0x4   :  { %p560_p1 = scmp.lt.u32.totalorder %s556_s16, %s731_s0 }
   0x6   :  { %p562_p2 = pnand %p560_p1, %p557_p0 }
   0x8   :  { %565 = shalt.err (!%p562_p2)
}
   0x9   :  { %s566_s21 = scalar_lea.vmem %s17_s13, 256  ;;  %p571_p4 = scmp.lt.s32.totalorder %s17_s13, %s17_s13 }
   0xa   :  { %p567_p3 = scmp.ne.s32.totalorder %s17_s13, %s566_s21  ;;  %p572_p5 = scmp.lt.s32.totalorder %s566_s21, %s566_s21 }
   0xc   :  { %p573_p6 = por %p572_p5, %p571_p4 }
   0xe   :  { %p574_p7 = pnand %p573_p6, %p567_p3 }
  0x10   :  { %577 = shalt.err (!%p574_p7)
}
  0x11   :  { %s629_s22 = smov 128   ;;  %s630_s23 = smov 8  }
  0x12   :  { %22 = dma.hbm_to_vmem [thread:$0]  %s731_s0, 256, %s17_s13, [#allocation3], %s629_s22, %s629_s22, %s630_s23  }
  0x13   :  { %s631_s26 = smov [#allocation5]   ;;  %s578_s30 = scalar_lea.hbm %s732_s1, 256 }
  0x14   :  { %s28_s27 = sshll.u32 %s631_s26, 4  ;;  %p579_p8 = scmp.ne.s32.totalorder %s732_s1, %s578_s30  ;;  %s29_s27 = int_to_ptr.vmem [resolvable:$true] %s28_s27 }
  0x15   :  { %p582_p9 = scmp.lt.u32.totalorder %s578_s30, %s732_s1 }
  0x17   :  { %p584_p10 = pnand %p582_p9, %p579_p8 }
  0x19   :  { %587 = shalt.err (!%p584_p10)
}
  0x1a   :  { %s588_s8 = scalar_lea.vmem %s29_s27, 256  ;;  %p593_p12 = scmp.lt.s32.totalorder %s29_s27, %s29_s27 }
  0x1b   :  { %p589_p11 = scmp.ne.s32.totalorder %s29_s27, %s588_s8  ;;  %p594_p13 = scmp.lt.s32.totalorder %s588_s8, %s588_s8 }
  0x1d   :  { %p595_p0 = por %p594_p13, %p593_p12 }
  0x1f   :  { %p596_p1 = pnand %p595_p0, %p589_p11 }
  0x21   :  { %599 = shalt.err (!%p596_p1)
}
  0x22   :  { %34 = dma.hbm_to_vmem [thread:$0]  %s732_s1, 256, %s29_s27, [#allocation6], %s629_s22, %s629_s22, %s630_s23  }
  0x23   :  { %622 = dma.done.wait [#allocation3], 256  }
  0x24   :  { %623 = vsyncadd [#allocation3], 4294967040 }
  0x25   :  { %624 = dma.done.wait [#allocation6], 256  }
  0x26   :  { %625 = vsyncadd [#allocation6], 4294967040  ;;  %vm54_vm0 = vcmask 130048   ;;  %v45_v0 = vld [vmem:[#allocation5] sm:$0xff]  ;;  %v46_v1 = vld [vmem:[#allocation5 + $0x8] sm:$0xff]  ;;  %v632_v5 = vmov 0.0  }
  0x27   :  { %v43_v2 = vld [vmem:[#allocation2] sm:$0xff]  ;;  %v535_v3 = vpack.c.bf16 %v46_v1, %v45_v0  ;;  %v44_v4 = vld [vmem:[#allocation2 + $0x8] sm:$0xff]  ;;  %515 = vmatprep.subr.mxu1 %v632_v5  ;;  %vm633_vm1 = vmmov 0   ;;  %s634_s11 = smov 112   ;;  %vm214_vm2 = vcmask 64512   ;;  %s636_s12 = smov [#allocation7]  }
  0x28   :  { %512 = vmatprep.mubr.msk.f32.mxu0 %vm54_vm0, %v43_v2  ;;  %517 = vmatprep.mubr.msk.f32.mxu1 %vm633_vm1, %v632_v5  ;;  %v487_v6 = vld [vmem:[%s733_s2] ss:$0 sm:$0xff]  ;;  %s635_s2 = smov 96   ;;  %s474_s13 = sshll.u32 %s636_s12, 4  ;;  %s475_s13 = int_to_ptr.vmem [resolvable:$true] %s474_s13 }
  0x29   :  { %536 = vmatprep.subr.bf16.mxu0 %v535_v3  ;;  %s600_s14 = scalar_lea.vmem %s475_s13, 256  ;;  %p605_p3 = scmp.lt.s32.totalorder %s475_s13, %s475_s13 }
  0x2a   :  { %538 = vmatpush3.bf16.msra.mxu0 %v535_v3  ;;  %p601_p2 = scmp.ne.s32.totalorder %s475_s13, %s600_s14  ;;  %p606_p4 = scmp.lt.s32.totalorder %s600_s14, %s600_s14 }
  0x2b   :  { %520 = vmatprep.subr.mxu0 %v632_v5 }
  0x2c   :  { %p607_p5 = por %p606_p4, %p605_p3 }
  0x2d   :  { %513 = vmatmul.mubr.msk.f32.vlgmr.msra.gmra.mrb[0].mxu0 %vm54_vm0, %v44_v4 }
  0x2e   :  { %522 = vmatprep.mubr.msk.f32.mxu0 %vm633_vm1, %v632_v5  ;;  %p608_p6 = pnand %p607_p5, %p601_p2 }
 0x100   :  { %v514_v7 = vpop.f32.mrb[0].mxu0 }
 0x101   :  { %v127_v8 = vpop.f32.mrb[1].mxu0  ;;  %v133_v10 = vadd.f32 %v514_v7, %v487_v6 }
 0x102   :  { %v128_v9 = vadd.f32 %v487_v6, %v127_v8 }
 0x104   :  { %137 = vrot.lane.b32.xlu0 %v128_v9, %s634_s11 }
 0x108   :  { %303 = vrot.lane.b32.xlu0 %v133_v10, %s634_s11 }
 0x176   :  { %v138_v11 = vpop.permute.xlu0 %137 }
 0x177   :  { %516 = vmatpush3.xpose.msk.msra.mxu1 %vm54_vm0, %v138_v11 }
 0x178   :  { %525 = vmatprep.subr.mxu1 %v632_v5 }
 0x17a   :  { %518 = vmatmul.mubr.msk.f32.vlgmr.msra.gmra.mrb[0].mxu1 %vm54_vm0, %v128_v9  ;;  %v304_v12 = vpop.permute.xlu0 %303 }
 0x17b   :  { %526 = vmatpush3.xpose.msk.msra.mxu1 %vm54_vm0, %v304_v12  ;;  %527 = vmatprep.mubr.msk.f32.mxu1 %vm633_vm1, %v632_v5 }
 0x17e   :  { %528 = vmatmul.mubr.msk.f32.vlgmr.msra.gmra.mrb[2].mxu1 %vm54_vm0, %v133_v10 }
 0x24d   :  { %v209_v13 = vpop.f32.mrb[0].mxu1 }
 0x24e   :  { %v213_v14 = vmul.f32 0.25, %v209_v13  ;;  %v519_v15 = vpop.f32.mrb[1].mxu1 }
 0x250   :  { %v215_v16 = vsel %vm214_vm2, %v213_v14, -inf }
 0x251   :  { %216 = vmax.xlane.f32.xlu1 %v215_v16  ;;  %v375_v17 = vpop.f32.mrb[2].mxu1 }
 0x252   :  { %v379_v18 = vmul.f32 0.25, %v375_v17  ;;  %v529_v19 = vpop.f32.mrb[3].mxu1 }
 0x254   :  { %v380_v20 = vsel %vm214_vm2, %v379_v18, -inf }
 0x255   :  { %381 = vmax.xlane.f32.xlu1 %v380_v20 }
 0x266   :  { %226 = vrot.lane.b32.xlu1 %v128_v9, %s635_s2 }
 0x2de   :  { %v217_v21 = vpop.xlane.xlu1 %216 }
 0x2df   :  { %v218_v22 = vsub.f32 %v213_v14, %v217_v21 }
 0x2e1   :  { %v219_v23 = vmul.f32 1.442695, %v218_v22 }
 0x2e2   :  { %v382_v24 = vpop.xlane.xlu1 %381 }
 0x2e3   :  { %548 = vpow2.f32 %v219_v23  ;;  %v383_v25 = vsub.f32 %v379_v18, %v382_v24 }
 0x2e5   :  { %v384_v26 = vmul.f32 1.442695, %v383_v25 }
 0x2e6   :  { %v227_v27 = vpop.permute.xlu1 %226 }
 0x2e7   :  { %550 = vpow2.f32 %v384_v26  ;;  %521 = vmatpush3.msra.mxu0 %v227_v27 }
 0x2e8   :  { %530 = vmatprep.subr.mxu0 %v632_v5 }
 0x2ed   :  { %v549_v28 = vpop.eup %548 }
 0x2ee   :  { %v221_v29 = vsel %vm214_vm2, %v549_v28, 0.0 }
 0x2ef   :  { %222 = vadd.xlane.f32.xlu0 %v221_v29 }
 0x2f1   :  { %v551_v30 = vpop.eup %550 }
 0x2f2   :  { %v386_v31 = vsel %vm214_vm2, %v551_v30, 0.0 }
 0x2f3   :  { %387 = vadd.xlane.f32.xlu1 %v386_v31 }
 0x304   :  { %391 = vrot.lane.b32.xlu1 %v133_v10, %s635_s2 }
 0x37c   :  { %v223_v32 = vpop.xlane.xlu0 %222 }
 0x37d   :  { %552 = vrcp.f32 %v223_v32 }
 0x380   :  { %v388_v33 = vpop.xlane.xlu1 %387 }
 0x381   :  { %554 = vrcp.f32 %v388_v33 }
 0x384   :  { %v392_v36 = vpop.permute.xlu1 %391 }
 0x387   :  { %v553_v34 = vpop.eup %552 }
 0x388   :  { %v225_v35 = vmul.f32 %v553_v34, %v549_v28 }
 0x38a   :  { %523 = vmatmul.mubr.msk.f32.vlgmr.msra.gmra.mrb[2].mxu0 %vm214_vm2, %v225_v35 }
 0x38b   :  { %v555_v37 = vpop.eup %554  ;;  %531 = vmatpush3.msra.mxu0 %v392_v36  ;;  %532 = vmatprep.mubr.msk.f32.mxu0 %vm633_vm1, %v632_v5 }
 0x38c   :  { %v390_v38 = vmul.f32 %v555_v37, %v551_v30 }
 0x38e   :  { %533 = vmatmul.mubr.msk.f32.vlgmr.msra.gmra.mrb[4].mxu0 %vm214_vm2, %v390_v38 }
 0x45d   :  { %v298_v39 = vpop.f32.mrb[2].mxu0 }
 0x45e   :  { %467 = vst.msk [vmem:[#allocation7] sm:$0xff] %vm54_vm0, %v298_v39  ;;  %v524_v40 = vpop.f32.mrb[3].mxu0 }
 0x461   :  { %v463_v41 = vpop.f32.mrb[4].mxu0 }
 0x462   :  { %468 = vst.msk [vmem:[#allocation7 + $0x8] sm:$0xff] %vm54_vm0, %v463_v41  ;;  %v534_v42 = vpop.f32.mrb[5].mxu0 }
 0x463   :  { %611 = shalt.err (!%p608_p6)
}
 0x464   :  { %s612_s17 = scalar_lea.hbm %s734_s3, 256 }
 0x465   :  { %p613_p7 = scmp.ne.s32.totalorder %s734_s3, %s612_s17  ;;  %p616_p8 = scmp.lt.u32.totalorder %s612_s17, %s734_s3 }
 0x467   :  { %p618_p9 = pnand %p616_p8, %p613_p7 }
 0x469   :  { %621 = shalt.err (!%p618_p9)
}
 0x46a   :  { %480 = dma.vmem_to_hbm [thread:$0]  %s475_s13, 256, %s734_s3, [#allocation4], %s629_s22, %s629_s22, %s630_s23  }
 0x46b   :  { %626 = dma.done.wait [#allocation4], 256  }
 0x46c   :  { %627 = vsyncadd [#allocation4], 4294967040 }
 0x46d   :  { %484 = vsyncpa [#allocation3], 1 }
 0x46e   :  { %485 = vsyncpa [#allocation6], 1 }
 0x46f   :  { %486 = vsyncpa [#allocation4], 1 }

</bundles_post_ra>
